<compile_context>
chip_gen: v6e
topology: v6e:2x2x1
jax: 0.10.0
libtpu: 0.0.40
codegen_flags: <defaults>
</compile_context>

<pallas_src>
import jax
import jax.numpy as jnp
from jax.experimental import pallas as pl
from jax.experimental.pallas import tpu as pltpu


# --------------------------------------------------------------------------
# Kernel: one (tm, tn) output tile, accumulated over the K grid axis.
# --------------------------------------------------------------------------
def _vn_matmul_kernel(w_ref, x_ref, o_ref, acc_ref):
    # w_ref: (tm, tk)   weight tile
    # x_ref: (tk, tn)   activation tile (lane-dense: N = padded B*vec_dim)
    # o_ref: (tm, tn)   output tile (resident across the K axis)
    # acc_ref: (tm, tn) f32 accumulator scratch
    @pl.when(pl.program_id(2) == 0)
    def _():
        acc_ref[...] = jnp.zeros_like(acc_ref)

    acc_ref[...] += jnp.dot(
        w_ref[...], x_ref[...], preferred_element_type=jnp.float32
    )

    @pl.when(pl.program_id(2) == pl.num_programs(2) - 1)
    def _():
        o_ref[...] = acc_ref[...].astype(o_ref.dtype)


# --------------------------------------------------------------------------
# Tiling helpers.
# --------------------------------------------------------------------------
def _round_up(x, m):
    return ((x + m - 1) // m) * m


def _pick_tile(dim, align, candidates=(512, 256, 128)):
    """Largest MXU-friendly tile with modest (<~25%) padding waste; small
    dims are simply padded up to `align` and used as a single block."""
    for c in candidates:
        if dim >= c and (_round_up(dim, c) - dim) * 4 <= dim:
            return c
    if dim >= candidates[-1]:
        return candidates[-1]
    return _round_up(dim, align)


# --------------------------------------------------------------------------
# Wrapper.
# --------------------------------------------------------------------------
def vector_neuron_forward(weights, x, *, compute_dtype=None, use_pallas=None):
    """Pallas TPU equivalent of torch.matmul(weights, x).

    weights: (out_features, in_features)
    x:       (B, in_features, vec_dim)
    returns: (B, out_features, vec_dim)
    """
    out_features, in_features = weights.shape
    B, in_f, vec_dim = x.shape
    assert in_f == in_features, (in_f, in_features)

    out_dtype = x.dtype
    if compute_dtype is not None:
        weights = weights.astype(compute_dtype)
        x = x.astype(compute_dtype)

    M, K = out_features, in_features
    N = B * vec_dim

    # Small-problem fallback: a custom call + two transposes is pure fixed
    # overhead for tiny matmuls; let XLA's fused dot handle them.
    if use_pallas is None:
        use_pallas = (2 * M * K * N) >= 4_000_000
    if not use_pallas:
        return jnp.matmul(weights, x).astype(out_dtype)

    # ---- layout plumbing (outside the kernel): fold batch into N ----------
    #   (B, K, V) -> (K, B, V) -> (K, B*V)
    x2d = jnp.transpose(x, (1, 0, 2)).reshape(K, N)

    # ---- tile selection + padding to (8, 128)-aligned multiples -----------
    tm = _pick_tile(M, align=8)     # sublane axis of W / output
    tn = _pick_tile(N, align=128)   # lane axis of x / output
    tk = _pick_tile(K, align=128)   # lane axis of W, sublane axis of x

    M_pad = _round_up(M, tm)
    N_pad = _round_up(N, tn)
    K_pad = _round_up(K, tk)

    # v7x megacore: guarantee >= 2 parallel tiles when the problem allows.
    if M_pad // tm == 1 and N_pad // tn == 1 and M_pad >= 16 and M_pad % 16 == 0:
        tm = M_pad // 2

    grid_m, grid_n, grid_k = M_pad // tm, N_pad // tn, K_pad // tk

    w_p = weights
    if (M_pad, K_pad) != (M, K):
        w_p = jnp.pad(weights, ((0, M_pad - M), (0, K_pad - K)))
    if (K_pad, N_pad) != (K, N):
        x2d = jnp.pad(x2d, ((0, K_pad - K), (0, N_pad - N)))

    in_item = jnp.dtype(w_p.dtype).itemsize
    out_item = jnp.dtype(out_dtype).itemsize

    # ---- VMEM budget for the chosen tiles (double-buffered I/O + acc) -----
    vmem_needed = (
        2 * (tm * tk + tk * tn) * in_item   # double-buffered input tiles
        + 2 * tm * tn * out_item            # double-buffered output tile
        + tm * tn * 4                       # f32 accumulator scratch
    )
    vmem_limit = min(max(2 * vmem_needed, 16 * 1024 * 1024), 48 * 1024 * 1024)

    # ---- cost estimate reflecting actual re-streaming of operands ---------
    cost = pl.CostEstimate(
        flops=2 * M_pad * K_pad * N_pad,
        transcendentals=0,
        bytes_accessed=(
            grid_n * M_pad * K_pad * in_item      # W re-read per N tile
            + grid_m * K_pad * N_pad * in_item    # X re-read per M tile
            + M_pad * N_pad * out_item
        ),
    )

    y2d = pl.pallas_call(
        _vn_matmul_kernel,
        out_shape=jax.ShapeDtypeStruct((M_pad, N_pad), out_dtype),
        grid_spec=pltpu.PrefetchScalarGridSpec(
            num_scalar_prefetch=0,
            grid=(grid_m, grid_n, grid_k),
            in_specs=[
                pl.BlockSpec((tm, tk), lambda i, j, k: (i, k)),
                pl.BlockSpec((tk, tn), lambda i, j, k: (k, j)),
            ],
            out_specs=pl.BlockSpec((tm, tn), lambda i, j, k: (i, j)),
            scratch_shapes=[pltpu.VMEM((tm, tn), jnp.float32)],
        ),
        compiler_params=pltpu.CompilerParams(
            dimension_semantics=("parallel", "parallel", "arbitrary"),
            vmem_limit_bytes=int(vmem_limit),
        ),
        cost_estimate=cost,
    )(w_p, x2d)

    # Slice off padding, then (M, B*V) -> (M, B, V) -> (B, M, V).
    y2d = y2d[:M, :N]
    return jnp.transpose(y2d.reshape(M, B, vec_dim), (1, 0, 2)).astype(out_dtype)


# --------------------------------------------------------------------------
# Demo / self-check.
# --------------------------------------------------------------------------
if __name__ == "__main__":
    # Small, deterministic setup consistent with the module's __init__/forward.
    in_features = 32
    out_features = 64
    batch = 2
    vec_dim = 3  # vector-neuron 3D vectors

    key = jax.random.PRNGKey(0)
    kw, kx = jax.random.split(key)

    # nn.Parameter(torch.randn(out_features, in_features)) -> standard normal.
    weights = jax.random.normal(kw, (out_features, in_features), dtype=jnp.float32)
    x = jax.random.normal(kx, (batch, in_features, vec_dim), dtype=jnp.float32)

    # Force the Pallas path so the kernel itself is exercised even though this
    # demo problem is below the auto-dispatch threshold.
    out = vector_neuron_forward(weights, x, use_pallas=True)
    out = jax.block_until_ready(out)

    # Reference: same semantics as torch.matmul (W broadcast over batch).
    ref = jnp.matmul(weights, x)
    assert out.shape == (batch, out_features, vec_dim), out.shape
    assert jnp.allclose(out, ref, atol=1e-5, rtol=1e-5), float(
        jnp.max(jnp.abs(out - ref))
    )

    # Also sanity-check the auto-dispatch (fallback) path.
    out_auto = jax.block_until_ready(vector_neuron_forward(weights, x))
    assert jnp.allclose(out_auto, ref, atol=1e-5, rtol=1e-5)

    print("KERNEL_OK")
</pallas_src>

<mosaic_0001>
module attributes {stable_mosaic.version = 11 : i64} {
  func.func @_vn_matmul_kernel(%arg0: i32, %arg1: i32, %arg2: i32, %arg3: memref<32x128xf32, #tpu.memory_space<vmem>>, %arg4: memref<128x128xf32, #tpu.memory_space<vmem>>, %arg5: memref<32x128xf32, #tpu.memory_space<vmem>>, %arg6: memref<32x128xf32, #tpu.memory_space<vmem>>) attributes {dimension_semantics = [#tpu.dimension_semantics<parallel>, #tpu.dimension_semantics<parallel>, #tpu.dimension_semantics<arbitrary>], iteration_bounds = array<i64: 2, 1, 1>, scalar_prefetch = 0 : i64, scratch_operands = 1 : i64, tpu.core_type = #tpu.core_type<tc>, window_params = [{transform_indices = @transform_0, window_bounds = array<i64: 32, 128>}, {transform_indices = @transform_1, window_bounds = array<i64: 128, 128>}, {transform_indices = @transform_2, window_bounds = array<i64: 32, 128>}]} {
    %c0_i32 = arith.constant 0 : i32
    %0 = arith.cmpi eq, %arg2, %c0_i32 : i32
    %1 = arith.extui %0 : i1 to i32
    %c0_i32_0 = arith.constant 0 : i32
    %2 = arith.cmpi ne, %1, %c0_i32_0 : i32
    scf.if %2 {
      %cst_10 = arith.constant 0.000000e+00 : f32
      %12 = vector.broadcast %cst_10 : f32 to vector<32x128xf32>
      %c0_11 = arith.constant 0 : index
      %c0_12 = arith.constant 0 : index
      %13 = vector.load %arg6[%c0_11, %c0_12] : memref<32x128xf32, #tpu.memory_space<vmem>>, vector<32x128xf32>
      tpu.vector_store %arg6[%c0_11, %c0_12], %12 {strides = array<i32>} : memref<32x128xf32, #tpu.memory_space<vmem>>, vector<32x128xf32>,
    } else {
    }
    %c0 = arith.constant 0 : index
    %c0_1 = arith.constant 0 : index
    %3 = vector.load %arg6[%c0, %c0_1] : memref<32x128xf32, #tpu.memory_space<vmem>>, vector<32x128xf32>
    %c0_2 = arith.constant 0 : index
    %c0_3 = arith.constant 0 : index
    %4 = vector.load %arg3[%c0_2, %c0_3] : memref<32x128xf32, #tpu.memory_space<vmem>>, vector<32x128xf32>
    %c0_4 = arith.constant 0 : index
    %c0_5 = arith.constant 0 : index
    %5 = vector.load %arg4[%c0_4, %c0_5] : memref<128x128xf32, #tpu.memory_space<vmem>>, vector<128x128xf32>
    %cst = arith.constant dense<0.000000e+00> : vector<32x128xf32>
    %6 = tpu.matmul %4, %5, %cst {dimension_numbers = #tpu.dot_dimension_numbers<[1], [0], [0], [1], [0, 0, 1, 1], [], []>} : vector<32x128xf32>, vector<128x128xf32>, vector<32x128xf32> -> vector<32x128xf32>
    %7 = arith.addf %3, %6 : vector<32x128xf32>
    %c0_6 = arith.constant 0 : index
    %c0_7 = arith.constant 0 : index
    %8 = vector.load %arg6[%c0_6, %c0_7] : memref<32x128xf32, #tpu.memory_space<vmem>>, vector<32x128xf32>
    tpu.vector_store %arg6[%c0_6, %c0_7], %7 {strides = array<i32>} : memref<32x128xf32, #tpu.memory_space<vmem>>, vector<32x128xf32>,
    %c0_i32_8 = arith.constant 0 : i32
    %9 = arith.cmpi eq, %arg2, %c0_i32_8 : i32
    %10 = arith.extui %9 : i1 to i32
    %c0_i32_9 = arith.constant 0 : i32
    %11 = arith.cmpi ne, %10, %c0_i32_9 : i32
    scf.if %11 {
      %c0_10 = arith.constant 0 : index
      %c0_11 = arith.constant 0 : index
      %12 = vector.load %arg6[%c0_10, %c0_11] : memref<32x128xf32, #tpu.memory_space<vmem>>, vector<32x128xf32>
      %c0_12 = arith.constant 0 : index
      %c0_13 = arith.constant 0 : index
      %13 = vector.load %arg5[%c0_12, %c0_13] : memref<32x128xf32, #tpu.memory_space<vmem>>, vector<32x128xf32>
      tpu.vector_store %arg5[%c0_12, %c0_13], %12 {strides = array<i32>} : memref<32x128xf32, #tpu.memory_space<vmem>>, vector<32x128xf32>,
    } else {
    }
    return
  }
  func.func @transform_0(%arg0: i32, %arg1: i32, %arg2: i32) -> (i32, i32) {
    %c0_i32 = arith.constant 0 : i32
    return %arg0, %arg2 : i32, i32
  }
  func.func @transform_1(%arg0: i32, %arg1: i32, %arg2: i32) -> (i32, i32) {
    %c0_i32 = arith.constant 0 : i32
    return %arg2, %arg1 : i32, i32
  }
  func.func @transform_2(%arg0: i32, %arg1: i32, %arg2: i32) -> (i32, i32) {
    %c0_i32 = arith.constant 0 : i32
    return %arg0, %arg1 : i32, i32
  }
}

</mosaic_0001>

<bundles_post_ra>
// kernel: tpu_custom_call.1
= control target key start
LH: loop header
LB: loop body
LE: loop exit
PB: predicated region body
PF: predicated region fallthrough
CT: control target
= control target key end

     0   :  { %7 = vsyncpa [#allocation4], 0  ;;  %s1013_s0 = inlined_call_operand.hbm [shape: f32[64,128], index: 0, kind: input, shape index: {}]   ;;  %s1014_s1 = inlined_call_operand.hbm [shape: f32[128,128], index: 1, kind: input, shape index: {}]   ;;  %s1015_s2 = inlined_call_operand.hbm [shape: f32[64,128], index: 2, kind: output, shape index: {}]  }
   0x1   :  { %9 = vsyncpa [#allocation4 + $0x1], 0 }
   0x2   :  { %10 = vsyncpa [#allocation7], 0 }
   0x3   :  { %11 = vsyncpa [#allocation5], 0 }
   0x4   :  { %13 = vsyncpa [#allocation5 + $0x1], 0  ;;  %s816_s9 = smov 0   ;;  %s818_s10 = smov 0  }
   0x5   :  { %s820_s11 = smov 0   ;;  %s822_s12 = smov 0  }
   0x6   :  { %s824_s13 = smov 0   ;;  %s826_s14 = smov 0  }
   0x7 LB: > { %s468_s15 = sadd.s32 4294967295, %s792_s14   ;;  %s469_s16 = sadd.s32 4294967294, %s792_s14   ;;  %s792_s14 = sphi %s826_s14, %s19_s14   ;;  %s788_s13 = sphi %s824_s13, %s1035_s13   ;;  %s784_s12 = sphi %s822_s12, %s1034_s12   ;;  %s780_s11 = sphi %s820_s11, %s1033_s11   ;;  %s776_s10 = sphi %s818_s10, %s1032_s10   ;;  %s772_s9 = sphi %s816_s9, %s1031_s9  }
   0x8   : > { %p60_p0 = scmp.ne.s32.totalorder %s776_s10, %s772_s9  ;;  %p850_p1 = scmp.eq.s32.totalorder %s468_s15, 0 }
   0x9   : > { %p854_p2 = scmp.eq.s32.totalorder %s468_s15, 1  ;;  %p120_p3 = scmp.eq.s32.totalorder %s469_s16, 1 }
   0xa   : > { %p860_p4 = por %p850_p1, %p60_p0  ;;  %p470_p5 = scmp.ge.s32.totalorder %s792_s14, 1 }
   0xb   : > { %p865_p6 = por %p120_p3, %p60_p0  ;;  %p127_p7 = scmp.lt.s32.totalorder %s792_s14, 3 }
   0xc   : > { %s1020_s19 = scalar_select %p860_p4, 1, 0 }
   0xd   : > { %s1021_s20 = scalar_select %p865_p6, 1, 0 }
   0xe   : > { %p870_p8 = pnand %p470_p5, %p127_p7  ;;  %s794_s22 = smov [#allocation6]  }
   0xf   : > { %s143_s23 = sshll.u32 %s794_s22, 4  ;;  %s38_s25 = sadd.s32 1, %s788_s13  ;;  %s144_s23 = int_to_ptr.vmem [resolvable:$true] %s143_s23 }
  0x10   : > { %p585_p9 = pneg %p870_p8  ;;  %s665_s26 = scalar_lea.vmem %s144_s23, 2048 }
  0x11   : > { %p666_p13 = scmp.ne.s32.totalorder %s144_s23, %s665_s26  ;;  %p673_p5 = scmp.lt.s32.totalorder %s144_s23, %s144_s23 }
  0x12   : > { %p879_p11 = pnand %p585_p9, %p850_p1  ;;  %p674_p7 = scmp.lt.s32.totalorder %s665_s26, %s665_s26 }
  0x14   : > { %p656_p12 = pneg %p879_p11  ;;  %p675_p6 = por %p674_p7, %p673_p5 }
  0x16   : > { %p668_p0 = pnand %p666_p13, %p656_p12 }
  0x18   : > { %p669_p3 = pneg %p668_p0 }
  0x1a   : > { %p676_p4 = pnand %p675_p6, %p669_p3 }
  0x1c   : > { %679 = shalt.err (!%p676_p4)
}
  0x1d   : > { %s1017_s27 = smov 128   ;;  %s796_s28 = smov 8  }
  0x1e   : > { %588 = dma.hbm_to_vmem [thread:$0]  (!%p879_p11), %s1014_s1, 2048, %s144_s23, [#allocation7], %s1017_s27, %s1017_s27, %s796_s28  }
  0x1f   : > { %p40_p4 = scmp.ge.s32.totalorder %s38_s25, 2  ;;  %s47_s3 = sadd.s32 1, %s780_s11 }
  0x20   : > { %p54_p6 = scmp.ne.s32.totalorder %s780_s11, %s776_s10  ;;  %p55_p9 = scmp.eq.s32.totalorder %s792_s14, 0 }
  0x21   : > { %s1037_s25 = smov (%p40_p4, %s38_s25), 0  ;;  %p598_p0 = scmp.lt.s32.totalorder %s792_s14, 2 }
  0x22   : > { %p900_p12 = por %p55_p9, %p54_p6  ;;  %p906_p13 = por %p854_p2, %p54_p6 }
  0x23   : > { %s42_s6 = ssub.s32 %s788_s13, %s1037_s25  ;;  %s157_s7 = sand.u32 1, %s780_s11  }
  0x24   : > { %p45_p11 = scmp.eq.s32.totalorder %s42_s6, 0  ;;  %s473_s8 = sshll.u32 %s157_s7, 5 }
  0x25   : > { %s485_s16 = sshll.u32 %s788_s13, 9  ;;  %s161_s26 = scalar_lea.vmem [#allocation3], %s473_s8 }
  0x26   : > { %s915_s15 = scalar_select %p45_p11, %s780_s11, %s47_s3  }
  0x27   : > { %s168_s24 = scalar_lea.hbm %s1013_s0, %s485_s16  ;;  %s169_s29 = sshll.u32 %s161_s26, 4  ;;  %s170_s29 = int_to_ptr.vmem [resolvable:$true] %s169_s29 }
  0x28   : > { %p923_p2 = pnand %p598_p0, %p900_p12  ;;  %s158_s30 = scalar_lea.sflag [#allocation4], %s157_s7 }
  0x29   : > { %s693_s6 = scalar_lea.vmem %s170_s29, 512  ;;  %s797_s3 = smov [#allocation3]  }
  0x2a   : > { %p682_p3 = pneg %p923_p2  ;;  %p694_p5 = scmp.ne.s32.totalorder %s170_s29, %s693_s6 }
  0x2b   : > { %s698_s27 = sshll.u32 %s797_s3, 4  ;;  %s699_s27 = int_to_ptr.vmem [resolvable:$false] %s698_s27 }
  0x2c   : > { %p696_p7 = pnand %p694_p5, %p682_p3  ;;  %s700_s16 = scalar_lea.vmem %s699_s27, 1024 }
  0x2d   : > { %p701_p6 = scmp.lt.s32.totalorder %s170_s29, %s699_s27  ;;  %p702_p9 = scmp.lt.s32.totalorder %s700_s16, %s693_s6 }
  0x2e   : > { %p697_p4 = pneg %p696_p7 }
  0x2f   : > { %p703_p11 = por %p702_p9, %p701_p6 }
  0x31   : > { %p704_p10 = pnand %p703_p11, %p697_p4 }
  0x33   : > { %707 = shalt.err (!%p704_p10)
}
  0x34   : > { %s1027_s4 = smov 128   ;;  %181 = sbr.rel (%p870_p8) target bundleno = 303 (0x12f), region = 28 }
  0x35   : > { %592 = dma.hbm_to_vmem [thread:$0]  (!%p923_p2), %s168_s24, 512, %s170_s29, %s158_s30, %s1027_s4, %s1027_s4, %s796_s28  }
  0x36   : > { %s937_s7 = sand.u32 (!%p870_p8), 1, %s776_s10   ;;  %p1028_p10 = scmp.ne.s32.totalorder (!%p870_p8), %s1020_s19, 0 }
  0x37   : > { %s477_s27 = sshll.u32 (!%p870_p8), %s937_s7, 5  ;;  %s184_s8 = scalar_lea.sflag (!%p870_p8), [#allocation4], %s937_s7 }
  0x38   : > { %s943_s22 = scalar_lea.vmem (!%p870_p8), [#allocation3], %s477_s27 }
  0x39   : > { %759 = dma.done.wait (%p1028_p10), %s184_s8, 512  }
  0x3a   : > { %761 = vsyncadd (%p1028_p10), %s184_s8, 4294966784 }
  0x3b   : > { %763 = dma.done.wait (%p850_p1), [#allocation7], 2048  }
  0x3c   : > { %765 = vsyncadd (%p850_p1), [#allocation7], 4294965248  ;;  %v246_v0 = vld [vmem:[#allocation6 + $0x78] sm:$0xff]  ;;  %v245_v1 = vld [vmem:[#allocation6 + $0x70] sm:$0xff]  ;;  %s211_s17 = scalar_lea.vmem [#allocation8], %s477_s27  ;;  %s486_s21 = sshll.u32 %s784_s12, 9 }
  0x3d   : > { %507 = vmatprep.subr.mxu0 %v246_v0  ;;  %545 = vmatprep.subr.mxu1 %v246_v0  ;;  %v244_v2 = vld [vmem:[#allocation6 + $0x68] sm:$0xff]  ;;  %v243_v3 = vld [vmem:[#allocation6 + $0x60] sm:$0xff]  ;;  %v242_v4 = vld [vmem:[#allocation6 + $0x58] sm:$0xff]  ;;  %s366_s19 = sshll.u32 %s211_s17, 4  ;;  %s965_s24 = scalar_lea.hbm %s1015_s2, %s486_s21  ;;  %s960_s19 = int_to_ptr.vmem [resolvable:$true] %s366_s19 }
  0x3e   : > { %508 = vmatpush3.msra.mxu0 %v246_v0  ;;  %561 = vmatpush3.msra.mxu1 %v246_v0  ;;  %v241_v5 = vld [vmem:[#allocation6 + $0x50] sm:$0xff]  ;;  %v240_v6 = vld [vmem:[#allocation6 + $0x48] sm:$0xff]  ;;  %v239_v7 = vld [vmem:[#allocation6 + $0x40] sm:$0xff]  ;;  %s352_s26 = scalar_lea.sflag [#allocation5], %s937_s7  ;;  %s708_s12 = scalar_lea.vmem %s960_s19, 512 }
  0x3f   : > { %509 = vmatprep.subr.mxu0 %v245_v1  ;;  %546 = vmatprep.subr.mxu1 %v245_v1  ;;  %v238_v8 = vld [vmem:[#allocation6 + $0x38] sm:$0xff]  ;;  %v237_v9 = vld [vmem:[#allocation6 + $0x30] sm:$0xff]  ;;  %v236_v10 = vld [vmem:[#allocation6 + $0x28] sm:$0xff]  ;;  %p709_p1 = scmp.ne.s32.totalorder %s960_s19, %s708_s12  ;;  %s798_s29 = smov [#allocation8]  }
  0x40   : > { %510 = vmatpush3.msra.mxu0 %v245_v1  ;;  %562 = vmatpush3.msra.mxu1 %v245_v1  ;;  %v235_v11 = vld [vmem:[#allocation6 + $0x20] sm:$0xff]  ;;  %v234_v12 = vld [vmem:[#allocation6 + $0x18] sm:$0xff]  ;;  %v233_v13 = vld [vmem:[#allocation6 + $0x10] sm:$0xff]  ;;  %s712_s18 = sshll.u32 %s798_s29, 4  ;;  %s713_s18 = int_to_ptr.vmem [resolvable:$false] %s712_s18 }
  0x41   : > { %511 = vmatprep.subr.mxu0 %v244_v2  ;;  %547 = vmatprep.subr.mxu1 %v244_v2  ;;  %v232_v14 = vld [vmem:[#allocation6 + $0x8] sm:$0xff]  ;;  %v231_v15 = vld [vmem:[#allocation6] sm:$0xff]  ;;  %v229_v17 = vld [vmem:[%s943_s22 + $0x10] sm:$0xff]  ;;  %p710_p8 = pnand %p709_p1, %p906_p13  ;;  %s714_s30 = scalar_lea.vmem %s713_s18, 1024 }
  0x42   : > { %512 = vmatpush3.msra.mxu0 %v244_v2  ;;  %563 = vmatpush3.msra.mxu1 %v244_v2  ;;  %v227_v16 = vld [vmem:[%s943_s22] sm:$0xff]  ;;  %v228_v18 = vld [vmem:[%s943_s22 + $0x8] sm:$0xff]  ;;  %v230_v19 = vld [vmem:[%s943_s22 + $0x18] sm:$0xff]  ;;  %p715_p0 = scmp.lt.s32.totalorder %s960_s19, %s713_s18  ;;  %p716_p2 = scmp.lt.s32.totalorder %s714_s30, %s708_s12 }
  0x43   : > { %513 = vmatprep.subr.mxu0 %v243_v3  ;;  %548 = vmatprep.subr.mxu1 %v243_v3  ;;  %p711_p12 = pneg %p710_p8 }
  0x44   : > { %514 = vmatpush3.msra.mxu0 %v243_v3  ;;  %564 = vmatpush3.msra.mxu1 %v243_v3  ;;  %p717_p3 = por %p716_p2, %p715_p0 }
  0x45   : > { %515 = vmatprep.subr.mxu0 %v242_v4  ;;  %549 = vmatprep.subr.mxu1 %v242_v4 }
  0x46   : > { %516 = vmatpush3.msra.mxu0 %v242_v4  ;;  %565 = vmatpush3.msra.mxu1 %v242_v4  ;;  %p718_p5 = pnand %p717_p3, %p711_p12 }
  0x47   : > { %517 = vmatprep.subr.mxu0 %v241_v5  ;;  %550 = vmatprep.subr.mxu1 %v241_v5 }
  0x48   : > { %518 = vmatpush3.msra.mxu0 %v241_v5  ;;  %566 = vmatpush3.msra.mxu1 %v241_v5 }
  0x49   : > { %519 = vmatprep.subr.mxu0 %v240_v6  ;;  %551 = vmatprep.subr.mxu1 %v240_v6 }
  0x4a   : > { %520 = vmatpush3.msra.mxu0 %v240_v6  ;;  %567 = vmatpush3.msra.mxu1 %v240_v6 }
  0x4b   : > { %521 = vmatprep.subr.mxu0 %v239_v7  ;;  %552 = vmatprep.subr.mxu1 %v239_v7 }
  0x4c   : > { %522 = vmatpush3.msra.mxu0 %v239_v7  ;;  %568 = vmatpush3.msra.mxu1 %v239_v7 }
  0x4d   : > { %523 = vmatprep.subr.mxu0 %v238_v8  ;;  %553 = vmatprep.subr.mxu1 %v238_v8 }
  0x4e   : > { %524 = vmatpush3.msra.mxu0 %v238_v8  ;;  %569 = vmatpush3.msra.mxu1 %v238_v8 }
  0x4f   : > { %525 = vmatprep.subr.mxu0 %v237_v9  ;;  %554 = vmatprep.subr.mxu1 %v237_v9 }
  0x50   : > { %526 = vmatpush3.msra.mxu0 %v237_v9  ;;  %570 = vmatpush3.msra.mxu1 %v237_v9 }
  0x51   : > { %527 = vmatprep.subr.mxu0 %v236_v10  ;;  %555 = vmatprep.subr.mxu1 %v236_v10 }
  0x52   : > { %528 = vmatpush3.msra.mxu0 %v236_v10  ;;  %571 = vmatpush3.msra.mxu1 %v236_v10 }
  0x53   : > { %529 = vmatprep.subr.mxu0 %v235_v11  ;;  %556 = vmatprep.subr.mxu1 %v235_v11 }
  0x54   : > { %530 = vmatpush3.msra.mxu0 %v235_v11  ;;  %572 = vmatpush3.msra.mxu1 %v235_v11 }
  0x55   : > { %531 = vmatprep.subr.mxu0 %v234_v12  ;;  %557 = vmatprep.subr.mxu1 %v234_v12 }
  0x56   : > { %532 = vmatpush3.msra.mxu0 %v234_v12  ;;  %573 = vmatpush3.msra.mxu1 %v234_v12 }
  0x57   : > { %533 = vmatprep.subr.mxu0 %v233_v13  ;;  %558 = vmatprep.subr.mxu1 %v233_v13 }
  0x58   : > { %534 = vmatpush3.msra.mxu0 %v233_v13  ;;  %574 = vmatpush3.msra.mxu1 %v233_v13 }
  0x59   : > { %535 = vmatprep.subr.mxu0 %v232_v14  ;;  %559 = vmatprep.subr.mxu1 %v232_v14 }
  0x5a   : > { %536 = vmatpush3.msra.mxu0 %v232_v14  ;;  %575 = vmatpush3.msra.mxu1 %v232_v14 }
  0x5b   : > { %537 = vmatprep.subr.mxu0 %v231_v15  ;;  %560 = vmatprep.subr.mxu1 %v231_v15 }
  0x5c   : > { %538 = vmatpush3.msra.mxu0 %v231_v15  ;;  %576 = vmatpush3.msra.mxu1 %v231_v15 }
  0x5d   : > { %539 = vmatprep.mubr.f32.mxu0 %v227_v16  ;;  %542 = vmatprep.mubr.f32.mxu1 %v229_v17 }
  0x5e   : > { %540 = vmatmul.mubr.f32.vlgmr.msra.gmra.mxu0 %v228_v18  ;;  %543 = vmatmul.mubr.f32.vlgmr.msra.gmra.mxu1 %v230_v19 }
 0x11e   : > { %v541_v20 = vpop.f32.mrf.mxu0  ;;  %v544_v21 = vpop.f32.mrf.mxu1 }
 0x11f   : > { %348 = vst [vmem:[%s211_s17 + $0x8] sm:$0xff] %v541_v20  ;;  %350 = vst [vmem:[%s211_s17 + $0x18] sm:$0xff] %v544_v21 }
 0x120   : > { %v313_v22 = vpop.f32.mrf.mxu0  ;;  %v323_v23 = vpop.f32.mrf.mxu1 }
 0x121   : > { %347 = vst [vmem:[%s211_s17] sm:$0xff] %v313_v22  ;;  %349 = vst [vmem:[%s211_s17 + $0x10] sm:$0xff] %v323_v23 }
 0x122   : > { %721 = shalt.err (!%p718_p5)
}
 0x123   : > { %s722_s6 = scalar_lea.hbm %s965_s24, 512  ;;  %s726_s4 = scalar_lea.hbm %s1015_s2, 1024 }
 0x124   : > { %p723_p7 = scmp.ne.s32.totalorder %s965_s24, %s722_s6  ;;  %p727_p9 = scmp.lt.s32.totalorder %s965_s24, %s1015_s2 }
 0x125   : > { %p728_p11 = scmp.lt.s32.totalorder %s726_s4, %s722_s6 }
 0x126   : > { %p724_p4 = pnand %p723_p7, %p906_p13 }
 0x127   : > { %p729_p10 = por %p728_p11, %p727_p9 }
 0x128   : > { %p725_p6 = pneg %p724_p4 }
 0x12a   : > { %p730_p1 = pnand %p729_p10, %p725_p6 }
 0x12c   : > { %733 = shalt.err (!%p730_p1)
}
 0x12d   : > { %s799_s22 = smov 128   ;;  %s800_s17 = smov 8  }
 0x12e   : > { %583 = dma.vmem_to_hbm [thread:$0]  (%p906_p13), %s960_s19, 512, %s965_s24, %s352_s26, %s799_s22, %s799_s22, %s800_s17  }
 0x12f PF: > { %s381_s21 = sand.u32 1, %s772_s9   ;;  %p1029_p8 = scmp.ne.s32.totalorder %s1021_s20, 0 }
 0x130   : > { %p1030_p12 = scmp.ge.s32.totalorder %s792_s14, 2  ;;  %s382_s28 = scalar_lea.sflag [#allocation5], %s381_s21 }
 0x132   : > { %p594_p0 = pnand %p1030_p12, %p1029_p8 }
 0x134   : > { %p595_p2 = pneg %p594_p0 }
 0x136   : > { %767 = dma.done.wait (%p595_p2), %s382_s28, 512  }
 0x137   : > { %769 = vsyncadd (%p595_p2), %s382_s28, 4294966784  ;;  %s19_s14 = sadd.s32 1, %s792_s14   ;;  %s1031_s9 = smov %s776_s10 }
 0x138   : > { %p16_p3 = scmp.ge.s32.totalorder %s19_s14, 4   ;;  %s1032_s10 = smov %s780_s11 }
 0x139   : > { %s1033_s11 = smov %s915_s15  ;;  %s1034_s12 = smov %s788_s13 }
 0x13a   : > { %s1035_s13 = smov %s1037_s25  ;;  %18 = sbr.rel (!%p16_p3) target bundleno = 7 (0x7), region = 86 }
 0x13f   :  { %387 = vsyncpa [#allocation4], 1 }
 0x140   :  { %389 = vsyncpa [#allocation4 + $0x1], 1 }
 0x141   :  { %390 = vsyncpa [#allocation7], 1 }
 0x142   :  { %391 = vsyncpa [#allocation5], 1 }
 0x143   :  { %393 = vsyncpa [#allocation5 + $0x1], 1 }

</bundles_post_ra>
